<compile_context>
chip_gen: v7x
topology: tpu7x:2x2x1
jax: 0.10.0
libtpu: 0.0.40
codegen_flags: <defaults>
</compile_context>

<pallas_src>
import functools

import jax
import jax.numpy as jnp
from jax.experimental import pallas as pl
from jax.experimental.pallas import tpu as pltpu


def _round_up(x, m):
    return (x + m - 1) // m * m


def _dismult_kernel(sub_ref, rel_ref, ent_ref, out_ref, *, compute_dtype):
    # obj: (tm, D)  — fused elementwise multiply on the VPU, feeding the MXU.
    obj = (sub_ref[...] * rel_ref[...]).astype(compute_dtype)
    ent = ent_ref[...].astype(compute_dtype)                      # (tn, D)

    # obj (tm, D) contracted with ent (tn, D) along D -> (tm, tn),
    # i.e. obj @ all_ent.T without materializing the transpose.
    x = jax.lax.dot_general(
        obj, ent,
        dimension_numbers=(((1,), (1,)), ((), ())),
        preferred_element_type=jnp.float32,
    )
    out_ref[...] = jax.nn.sigmoid(x).astype(out_ref.dtype)


def sf_dismult(all_ent, sub_emb, rel_emb, *, tm=None, tn=512,
               compute_dtype=None, out_dtype=None):
    """score = sigmoid((sub_emb * rel_emb) @ all_ent.T)"""
    B, D = sub_emb.shape
    N, D2 = all_ent.shape
    assert D == D2 and rel_emb.shape == (B, D)

    in_dtype = sub_emb.dtype
    compute_dtype = jnp.dtype(compute_dtype or in_dtype)
    out_dtype = jnp.dtype(out_dtype or in_dtype)

    # ---- tile sizes (multiples of (8, 128); kept within default scoped VMEM
    # even on v5e's 16 MiB for D up to ~1K in f32 / ~2K in bf16). ----
    D_pad = _round_up(D, 128)
    if tm is None:
        tm = min(256, _round_up(B, 8))
    tm = _round_up(tm, 8)
    B_pad = _round_up(B, tm)
    tn = _round_up(min(tn, _round_up(N, 128)), 128)
    N_pad = _round_up(N, tn)

    # ---- zero-pad to tile granularity (zeros are inert under the dot). ----
    def pad2(x, rows, cols):
        return jnp.pad(x, ((0, rows - x.shape[0]), (0, cols - x.shape[1])))

    sub_p = pad2(sub_emb, B_pad, D_pad)
    rel_p = pad2(rel_emb, B_pad, D_pad)
    ent_p = pad2(all_ent, N_pad, D_pad)

    grid = (B_pad // tm, N_pad // tn)

    itemsize = jnp.dtype(in_dtype).itemsize
    bytes_accessed = int(
        2 * B_pad * D_pad * itemsize                      # sub + rel (once per i)
        + grid[0] * N_pad * D_pad * itemsize              # all_ent, streamed per i-block
        + B_pad * N_pad * jnp.dtype(out_dtype).itemsize   # score writeback
    )

    kernel = functools.partial(_dismult_kernel, compute_dtype=compute_dtype)

    out = pl.pallas_call(
        kernel,
        out_shape=jax.ShapeDtypeStruct((B_pad, N_pad), out_dtype),
        grid_spec=pltpu.PrefetchScalarGridSpec(
            num_scalar_prefetch=0,
            grid=grid,
            in_specs=[
                pl.BlockSpec((tm, D_pad), lambda i, j: (i, 0)),  # sub_emb
                pl.BlockSpec((tm, D_pad), lambda i, j: (i, 0)),  # rel_emb
                pl.BlockSpec((tn, D_pad), lambda i, j: (j, 0)),  # all_ent
            ],
            out_specs=pl.BlockSpec((tm, tn), lambda i, j: (i, j)),
        ),
        compiler_params=pltpu.CompilerParams(
            dimension_semantics=("parallel", "parallel"),
        ),
        cost_estimate=pl.CostEstimate(
            flops=2 * B_pad * N_pad * D_pad,
            transcendentals=B_pad * N_pad,
            bytes_accessed=bytes_accessed,
        ),
    )(sub_p, rel_p, ent_p)

    return out[:B, :N]


if __name__ == "__main__":
    # Small but padding-exercising shapes: B=8 queries, N=1000 entities, D=200.
    B, N, D = 8, 1000, 200
    key = jax.random.PRNGKey(0)
    k1, k2, k3 = jax.random.split(key, 3)
    all_ent = jax.random.normal(k1, (N, D), dtype=jnp.float32)
    sub_emb = jax.random.normal(k2, (B, D), dtype=jnp.float32)
    rel_emb = jax.random.normal(k3, (B, D), dtype=jnp.float32)

    ref = jax.nn.sigmoid((sub_emb * rel_emb) @ all_ent.T)

    # Semantics-preserving path (matmul in the input dtype).
    score = jax.block_until_ready(sf_dismult(all_ent, sub_emb, rel_emb))
    assert score.shape == (B, N)
    assert jnp.allclose(score, ref, atol=1e-4, rtol=1e-4), (
        float(jnp.max(jnp.abs(score - ref))))

    # bf16-MXU path: halves the dominant all_ent HBM stream; sigmoid scores
    # tolerate the reduced-precision logits.
    score_bf16 = jax.block_until_ready(
        sf_dismult(all_ent, sub_emb, rel_emb, compute_dtype=jnp.bfloat16))
    assert score_bf16.shape == (B, N)
    assert float(jnp.max(jnp.abs(score_bf16 - ref))) < 6e-2

    print("KERNEL_OK")
</pallas_src>

<mosaic_0001>
module attributes {stable_mosaic.version = 11 : i64} {
  func.func @_dismult_kernel(%arg0: i32, %arg1: i32, %arg2: memref<8x256xf32, #tpu.memory_space<vmem>>, %arg3: memref<8x256xf32, #tpu.memory_space<vmem>>, %arg4: memref<512x256xf32, #tpu.memory_space<vmem>>, %arg5: memref<8x512xf32, #tpu.memory_space<vmem>>) attributes {dimension_semantics = [#tpu.dimension_semantics<parallel>, #tpu.dimension_semantics<parallel>], iteration_bounds = array<i64: 1, 2>, scalar_prefetch = 0 : i64, scratch_operands = 0 : i64, tpu.core_type = #tpu.core_type<tc>, window_params = [{transform_indices = @transform_0, window_bounds = array<i64: 8, 256>}, {transform_indices = @transform_1, window_bounds = array<i64: 8, 256>}, {transform_indices = @transform_2, window_bounds = array<i64: 512, 256>}, {transform_indices = @transform_3, window_bounds = array<i64: 8, 512>}]} {
    %c0 = arith.constant 0 : index
    %c0_0 = arith.constant 0 : index
    %0 = vector.load %arg2[%c0, %c0_0] : memref<8x256xf32, #tpu.memory_space<vmem>>, vector<8x256xf32>
    %c0_1 = arith.constant 0 : index
    %c0_2 = arith.constant 0 : index
    %1 = vector.load %arg3[%c0_1, %c0_2] : memref<8x256xf32, #tpu.memory_space<vmem>>, vector<8x256xf32>
    %2 = arith.mulf %0, %1 : vector<8x256xf32>
    %c0_3 = arith.constant 0 : index
    %c0_4 = arith.constant 0 : index
    %3 = vector.load %arg4[%c0_3, %c0_4] : memref<512x256xf32, #tpu.memory_space<vmem>>, vector<512x256xf32>
    %cst = arith.constant dense<0.000000e+00> : vector<8x512xf32>
    %4 = tpu.matmul %2, %3, %cst {dimension_numbers = #tpu.dot_dimension_numbers<[1], [1], [0], [0], [0, 0, 1, 0], [], []>} : vector<8x256xf32>, vector<512x256xf32>, vector<8x512xf32> -> vector<8x512xf32>
    %5 = arith.negf %4 : vector<8x512xf32>
    %6 = math.exp %5 : vector<8x512xf32>
    %cst_5 = arith.constant 1.000000e+00 : f32
    %7 = vector.broadcast %cst_5 : f32 to vector<8x512xf32>
    %8 = arith.addf %7, %6 : vector<8x512xf32>
    %9 = arith.divf %7, %8 : vector<8x512xf32>
    %c0_6 = arith.constant 0 : index
    %c0_7 = arith.constant 0 : index
    %10 = vector.load %arg5[%c0_6, %c0_7] : memref<8x512xf32, #tpu.memory_space<vmem>>, vector<8x512xf32>
    tpu.vector_store %arg5[%c0_6, %c0_7], %9 {strides = array<i32>} : memref<8x512xf32, #tpu.memory_space<vmem>>, vector<8x512xf32>,
    return
  }
  func.func @transform_0(%arg0: i32, %arg1: i32) -> (i32, i32) {
    %c0_i32 = arith.constant 0 : i32
    %c0_i32_0 = arith.constant 0 : i32
    return %arg0, %c0_i32 : i32, i32
  }
  func.func @transform_1(%arg0: i32, %arg1: i32) -> (i32, i32) {
    %c0_i32 = arith.constant 0 : i32
    %c0_i32_0 = arith.constant 0 : i32
    return %arg0, %c0_i32 : i32, i32
  }
  func.func @transform_2(%arg0: i32, %arg1: i32) -> (i32, i32) {
    %c0_i32 = arith.constant 0 : i32
    %c0_i32_0 = arith.constant 0 : i32
    return %arg1, %c0_i32 : i32, i32
  }
  func.func @transform_3(%arg0: i32, %arg1: i32) -> (i32, i32) {
    %c0_i32 = arith.constant 0 : i32
    return %arg0, %arg1 : i32, i32
  }
}

</mosaic_0001>

<bundles_post_ra>
// kernel: tpu_custom_call.1
= control target key start
LH: loop header
LB: loop body
LE: loop exit
PB: predicated region body
PF: predicated region fallthrough
CT: control target
= control target key end

     0   :  { %8 = vsyncpa [#allocation3], 0  ;;  %s1512_s0 = inlined_call_operand.hbm [shape: f32[8,256], index: 0, kind: input, shape index: {}]   ;;  %s1513_s1 = inlined_call_operand.hbm [shape: f32[8,256], index: 1, kind: input, shape index: {}]   ;;  %s1514_s2 = inlined_call_operand.hbm [shape: f32[1024,256], index: 2, kind: input, shape index: {}]   ;;  %s1515_s3 = inlined_call_operand.hbm [shape: f32[8,1024], index: 3, kind: output, shape index: {}]  }
   0x1   :  { %9 = vsyncpa [#allocation6], 0 }
   0x2   :  { %10 = vsyncpa [#allocation4], 0 }
   0x3   :  { %12 = vsyncpa [#allocation4 + $0x1], 0  ;;  %s1130_s12 = smov 0   ;;  %s1132_s13 = smov 0  }
   0x4   :  { %s1134_s14 = smov 0   ;;  %s1136_s15 = smov 0  }
   0x5   :  { %s1138_s16 = smov 0   ;;  %s1140_s17 = smov 0  }
   0x6 LB: > { %s1161_s18 = sadd.s32 4294967295, %s1102_s17   ;;  %s671_s19 = sadd.s32 4294967294, %s1102_s17   ;;  %s1102_s17 = sphi %s1140_s17, %s18_s17   ;;  %s1098_s16 = sphi %s1138_s16, %s1542_s16   ;;  %s1094_s15 = sphi %s1136_s15, %s1541_s15   ;;  %s1090_s14 = sphi %s1134_s14, %s1540_s14   ;;  %s1086_s13 = sphi %s1132_s13, %s1539_s13   ;;  %s1082_s12 = sphi %s1130_s12, %s1538_s12  }
   0x7   : > { %s89_s20 = sadd.s32 1, %s1090_s14  ;;  %p96_p0 = scmp.ne.s32.totalorder %s1090_s14, %s1086_s13 }
   0x8   : > { %p97_p1 = scmp.eq.s32.totalorder %s1102_s17, 0  ;;  %p102_p2 = scmp.ne.s32.totalorder %s1086_s13, %s1082_s12 }
   0x9   : > { %p1516_p3 = scmp.eq.s32.totalorder %s1161_s18, 0  ;;  %p128_p4 = scmp.eq.s32.totalorder %s1161_s18, 1 }
   0xa   : > { %p1172_p5 = por %p97_p1, %p96_p0  ;;  %p134_p6 = scmp.eq.s32.totalorder %s671_s19, 1 }
   0xb   : > { %p1178_p7 = por %p1516_p3, %p102_p2  ;;  %p1182_p8 = por %p128_p4, %p96_p0 }
   0xc   : > { %p1186_p9 = por %p134_p6, %p102_p2  ;;  %p672_p10 = scmp.ge.s32.totalorder %s1102_s17, 1 }
   0xd   : > { %s1522_s22 = scalar_select %p1178_p7, 1, 0 }
   0xe   : > { %s1523_s23 = scalar_select %p1182_p8, 1, 0 }
   0xf   : > { %s1524_s24 = scalar_select %p1186_p9, 1, 0 }
  0x10   : > { %p141_p11 = scmp.lt.s32.totalorder %s1102_s17, 3  ;;  %s1104_s26 = smov [#allocation2]  }
  0x11   : > { %s157_s27 = sshll.u32 %s1104_s26, 4  ;;  %p854_p1 = scmp.lt.s32.totalorder %s1102_s17, 2  ;;  %s158_s27 = int_to_ptr.vmem [resolvable:$true] %s157_s27 }
  0x12   : > { %p1193_p13 = pnand %p672_p10, %p141_p11  ;;  %s1105_s29 = smov [#allocation5]  }
  0x13   : > { %p1202_p4 = pnand %p854_p1, %p1172_p5  ;;  %s171_s30 = sshll.u32 %s1105_s29, 4  ;;  %s1212_s30 = int_to_ptr.vmem [resolvable:$true] %s171_s30 }
  0x14   : > { %s1525_s25 = scalar_select %p1193_p13, 1, 0 }
  0x15   : > { %p837_p0 = pneg %p1193_p13  ;;  %s926_s7 = scalar_lea.hbm %s1512_s0, 256 }
  0x16   : > { %s1526_s28 = scalar_select %p1202_p4, 1, 0 }
  0x17   : > { %p1208_p2 = pnand %p837_p0, %p1516_p3  ;;  %p927_p5 = scmp.ne.s32.totalorder %s1512_s0, %s926_s7 }
  0x18   : > { %p933_p1 = scmp.lt.u32.totalorder %s926_s7, %s1512_s0 }
  0x19   : > { %p928_p6 = pneg %p1208_p2 }
  0x1b   : > { %p929_p10 = pnand %p928_p6, %p927_p5 }
  0x1d   : > { %p930_p11 = pneg %p929_p10 }
  0x1f   : > { %p935_p0 = pnand %p933_p1, %p930_p11 }
  0x21   : > { %938 = shalt.err (!%p935_p0)
}
  0x22   : > { %s939_s19 = scalar_lea.vmem %s158_s27, 256  ;;  %p947_p8 = scmp.lt.s32.totalorder %s158_s27, %s158_s27 }
  0x23   : > { %p940_p12 = scmp.ne.s32.totalorder %s158_s27, %s939_s19  ;;  %p948_p7 = scmp.lt.s32.totalorder %s939_s19, %s939_s19 }
  0x25   : > { %p942_p3 = pnand %p940_p12, %p928_p6  ;;  %p949_p13 = por %p948_p7, %p947_p8 }
  0x27   : > { %p943_p9 = pneg %p942_p3 }
  0x29   : > { %p950_p4 = pnand %p949_p13, %p943_p9 }
  0x2b   : > { %953 = shalt.err (!%p950_p4)
}
  0x2c   : > { %840 = dma.hbm_to_vmem [thread:$0]  (!%p1208_p2), %s1512_s0, 256, %s158_s27, [#allocation3]  }
  0x2d   : > { %s954_s6 = scalar_lea.hbm %s1513_s1, 256 }
  0x2e   : > { %p955_p3 = scmp.ne.s32.totalorder %s1513_s1, %s954_s6  ;;  %p961_p9 = scmp.lt.u32.totalorder %s954_s6, %s1513_s1 }
  0x30   : > { %p957_p7 = pnand %p955_p3, %p928_p6 }
  0x32   : > { %p958_p8 = pneg %p957_p7 }
  0x34   : > { %p963_p12 = pnand %p961_p9, %p958_p8 }
  0x36   : > { %966 = shalt.err (!%p963_p12)
}
  0x37   : > { %s967_s27 = scalar_lea.vmem %s1212_s30, 256  ;;  %p975_p10 = scmp.lt.s32.totalorder %s1212_s30, %s1212_s30 }
  0x38   : > { %p968_p13 = scmp.ne.s32.totalorder %s1212_s30, %s967_s27  ;;  %p976_p11 = scmp.lt.s32.totalorder %s967_s27, %s967_s27 }
  0x3a   : > { %p970_p4 = pnand %p968_p13, %p928_p6  ;;  %p977_p1 = por %p976_p11, %p975_p10 }
  0x3c   : > { %p971_p5 = pneg %p970_p4 }
  0x3e   : > { %p978_p0 = pnand %p977_p1, %p971_p5 }
  0x40   : > { %981 = shalt.err (!%p978_p0)
}
  0x41   : > { %843 = dma.hbm_to_vmem [thread:$0]  (!%p1208_p2), %s1513_s1, 256, %s1212_s30, [#allocation6]  }
  0x42   : > { %s27_s21 = sadd.s32 1, %s1098_s16  ;;  %s182_s26 = sand.u32 1, %s1102_s17  }
  0x43   : > { %p28_p6 = scmp.ge.s32.totalorder %s27_s21, 2  ;;  %s184_s29 = sand.u32 1, %s1090_s14  }
  0x44   : > { %s695_s5 = sshll.u32 %s1098_s16, 14  ;;  %s676_s4 = sshll.u32 %s184_s29, 10 }
  0x45   : > { %s1544_s21 = smov (%p28_p6, %s27_s21), 0  ;;  %s1270_s8 = scalar_lea.hbm %s1514_s2, %s695_s5 }
  0x46   : > { %s86_s30 = ssub.s32 %s1098_s16, %s1544_s21  ;;  %s186_s9 = scalar_lea.vmem [#allocation7], %s676_s4 }
  0x47   : > { %p87_p2 = scmp.eq.s32.totalorder %s86_s30, 0  ;;  %s194_s10 = sshll.u32 %s186_s9, 4  ;;  %s1274_s10 = int_to_ptr.vmem [resolvable:$true] %s194_s10 }
  0x48   : > { %s1281_s11 = scalar_lea.sflag [#allocation3], %s182_s26  ;;  %s982_s19 = scalar_lea.hbm %s1270_s8, 16384 }
  0x49   : > { %s1279_s27 = scalar_select %p87_p2, %s1090_s14, %s89_s20  }
  0x4a   : > { %p983_p3 = scmp.ne.s32.totalorder %s1270_s8, %s982_s19  ;;  %p1528_p7 = scmp.ne.s32.totalorder %s1526_s28, 0 }
  0x4b   : > { %s987_s4 = scalar_lea.hbm %s1514_s2, 32768  ;;  %p988_p13 = scmp.lt.u32.totalorder %s1270_s8, %s1514_s2 }
  0x4c   : > { %p984_p8 = pneg %p1528_p7  ;;  %p989_p4 = scmp.lt.u32.totalorder %s987_s4, %s982_s19 }
  0x4d   : > { %p991_p10 = scmp.lt.u32.totalorder %s982_s19, %s1270_s8 }
  0x4e   : > { %p985_p9 = pnand %p984_p8, %p983_p3  ;;  %p990_p5 = por %p989_p4, %p988_p13 }
  0x50   : > { %p986_p12 = pneg %p985_p9  ;;  %p992_p11 = por %p991_p10, %p990_p5 }
  0x52   : > { %p993_p1 = pnand %p992_p11, %p986_p12 }
  0x54   : > { %996 = shalt.err (!%p993_p1)
}
  0x55   : > { %s997_s20 = scalar_lea.vmem %s1274_s10, 16384  ;;  %s1106_s26 = smov [#allocation7]  }
  0x56   : > { %p998_p0 = scmp.ne.s32.totalorder %s1274_s10, %s997_s20  ;;  %s1002_s30 = sshll.u32 %s1106_s26, 4  ;;  %s1003_s30 = int_to_ptr.vmem [resolvable:$false] %s1002_s30 }
  0x57   : > { %s1004_s9 = scalar_lea.vmem %s1003_s30, 32768  ;;  %p1005_p3 = scmp.lt.s32.totalorder %s1274_s10, %s1003_s30 }
  0x58   : > { %p1000_p6 = pnand %p998_p0, %p984_p8  ;;  %p1006_p9 = scmp.lt.s32.totalorder %s1004_s9, %s997_s20 }
  0x5a   : > { %p1001_p2 = pneg %p1000_p6  ;;  %p1007_p13 = por %p1006_p9, %p1005_p3 }
  0x5c   : > { %p1008_p4 = pnand %p1007_p13, %p1001_p2 }
  0x5e   : > { %1011 = shalt.err (!%p1008_p4)
}
  0x5f   : > { %s1107_s19 = smov 256   ;;  %s1108_s29 = smov 16  }
  0x60   : > { %847 = dma.hbm_to_vmem [thread:$0]  (!%p1528_p7), %s1270_s8, 16384, %s1274_s10, %s1281_s11, %s1107_s19, %s1107_s19, %s1108_s29  }
  0x61   : > { %p1529_p8 = scmp.ne.s32.totalorder %s1525_s25, 0 }
  0x62   : > { %p1530_p12 = scmp.eq.s32.totalorder (!%p1529_p8), %s1161_s18, 0 }
  0x63   : > { %206 = sbr.rel (%p1529_p8) target bundleno = 503 (0x1f7), region = 32 }
  0x6a   : > { %1065 = dma.done.wait (%p1530_p12), [#allocation3], 256   ;;  %p1531_p5 = pmov %p1530_p12 }
  0x6c   : > { %1067 = vsyncadd (%p1531_p5), [#allocation3], 4294967040  ;;  %p1532_p10 = pmov %p1531_p5 }
  0x6d   : > { %p1533_p11 = pmov %p1531_p5 }
  0x6e   : > { %1069 = dma.done.wait (%p1532_p10), [#allocation6], 256  }
  0x6f   : > { %1071 = vsyncadd (%p1533_p11), [#allocation6], 4294967040  ;;  %s216_s28 = sand.u32 1, %s1161_s18   ;;  %s1321_s8 = sand.u32 1, %s1086_s13  }
  0x70   : > { %s683_s25 = sshll.u32 %s1321_s8, 10  ;;  %s217_s10 = scalar_lea.sflag [#allocation3], %s216_s28 }
  0x71   : > { %s1324_s11 = scalar_lea.vmem [#allocation7], %s683_s25  ;;  %p1534_p7 = scmp.ne.s32.totalorder %s1522_s22, 0 }
  0x73   : > { %1073 = dma.done.wait (%p1534_p7), %s217_s10, 16384  }
  0x74   : > { %1075 = vsyncadd (%p1534_p7), %s217_s10, 4294950912  ;;  %v252_v0 = vld [vmem:[%s1324_s11 + $0x8] sm:$0xff]  ;;  %v254_v1 = vld [vmem:[%s1324_s11 + $0x18] sm:$0xff]  ;;  %s684_s18 = sshll.u32 %s1321_s8, 5  ;;  %s696_s22 = sshll.u32 %s1094_s15, 9 }
  0x75   : > { %v316_v2 = vld [vmem:[%s1324_s11 + $0x208] sm:$0xff]  ;;  %v697_v3 = vpack.c.bf16 %v254_v1, %v252_v0  ;;  %v318_v4 = vld [vmem:[%s1324_s11 + $0x218] sm:$0xff]  ;;  %v251_v5 = vld [vmem:[%s1324_s11] sm:$0xff]  ;;  %s242_s5 = scalar_lea.vmem [#allocation8], %s684_s18  ;;  %s1463_s20 = scalar_lea.hbm %s1515_s3, %s696_s22 }
  0x76   : > { %v253_v6 = vld [vmem:[%s1324_s11 + $0x10] sm:$0xff]  ;;  %v761_v7 = vpack.c.bf16 %v318_v4, %v316_v2  ;;  %v315_v9 = vld [vmem:[%s1324_s11 + $0x200] sm:$0xff]  ;;  %v256_v11 = vld [vmem:[%s1324_s11 + $0x28] sm:$0xff]  ;;  %s566_s4 = sshll.u32 %s242_s5, 4  ;;  %s550_s15 = scalar_lea.sflag [#allocation4], %s1321_s8  ;;  %s1465_s4 = int_to_ptr.vmem [resolvable:$true] %s566_s4 }
  0x77   : > { %v699_v8 = vpack.c.bf16 %v253_v6, %v251_v5  ;;  %v317_v10 = vld [vmem:[%s1324_s11 + $0x210] sm:$0xff]  ;;  %698 = vmatprep.subr.bf16.mxu0 %v697_v3  ;;  %v258_v13 = vld [vmem:[%s1324_s11 + $0x38] sm:$0xff]  ;;  %v320_v14 = vld [vmem:[%s1324_s11 + $0x228] sm:$0xff]  ;;  %s1012_s26 = scalar_lea.vmem %s1465_s4, 512  ;;  %p1535_p0 = scmp.ne.s32.totalorder %s1523_s23, 0 }
  0x78   : > { %v763_v12 = vpack.c.bf16 %v317_v10, %v315_v9  ;;  %v322_v15 = vld [vmem:[%s1324_s11 + $0x238] sm:$0xff]  ;;  %762 = vmatprep.subr.bf16.mxu1 %v761_v7  ;;  %v701_v16 = vpack.c.bf16 %v258_v13, %v256_v11  ;;  %v255_v18 = vld [vmem:[%s1324_s11 + $0x20] sm:$0xff]  ;;  %v257_v19 = vld [vmem:[%s1324_s11 + $0x30] sm:$0xff]  ;;  %p1013_p1 = scmp.ne.s32.totalorder %s1465_s4, %s1012_s26  ;;  %s1109_s30 = smov [#allocation8]  }
  0x79   : > { %700 = vmatpush1.bf16.xpose.msra.mxu0 %v699_v8  ;;  %v765_v17 = vpack.c.bf16 %v322_v15, %v320_v14  ;;  %v319_v20 = vld [vmem:[%s1324_s11 + $0x220] sm:$0xff]  ;;  %v321_v21 = vld [vmem:[%s1324_s11 + $0x230] sm:$0xff]  ;;  %v260_v22 = vld [vmem:[%s1324_s11 + $0x48] sm:$0xff]  ;;  %v703_v26 = vpack.c.bf16 %v257_v19, %v255_v18  ;;  %s1016_s9 = sshll.u32 %s1109_s30, 4  ;;  %s1017_s9 = int_to_ptr.vmem [resolvable:$false] %s1016_s9 }
  0x7a   : > { %764 = vmatpush1.bf16.xpose.msra.mxu1 %v763_v12  ;;  %702 = vmatprep.subr.bf16.mxu0 %v701_v16  ;;  %v262_v23 = vld [vmem:[%s1324_s11 + $0x58] sm:$0xff]  ;;  %v324_v24 = vld [vmem:[%s1324_s11 + $0x248] sm:$0xff]  ;;  %v767_v27 = vpack.c.bf16 %v321_v21, %v319_v20  ;;  %v259_v30 = vld [vmem:[%s1324_s11 + $0x40] sm:$0xff]  ;;  %p1014_p6 = pnand %p1013_p1, %p1535_p0  ;;  %s1018_s19 = scalar_lea.vmem %s1017_s9, 1024 }
  0x7b   : > { %766 = vmatprep.subr.bf16.mxu1 %v765_v17  ;;  %v326_v25 = vld [vmem:[%s1324_s11 + $0x258] sm:$0xff]  ;;  %v705_v28 = vpack.c.bf16 %v262_v23, %v260_v22  ;;  %v261_v31 = vld [vmem:[%s1324_s11 + $0x50] sm:$0xff]  ;;  %v323_v32 = vld [vmem:[%s1324_s11 + $0x240] sm:$0xff]  ;;  %p1019_p3 = scmp.lt.s32.totalorder %s1465_s4, %s1017_s9  ;;  %p1020_p9 = scmp.lt.s32.totalorder %s1018_s19, %s1012_s26 }
  0x7c   : > { %v769_v29 = vpack.c.bf16 %v326_v25, %v324_v24  ;;  %v325_v33 = vld [vmem:[%s1324_s11 + $0x250] sm:$0xff]  ;;  %v264_v34 = vld [vmem:[%s1324_s11 + $0x68] sm:$0xff]  ;;  %v266_v35 = vld [vmem:[%s1324_s11 + $0x78] sm:$0xff]  ;;  %v707_v38 = vpack.c.bf16 %v261_v31, %v259_v30  ;;  %p1015_p2 = pneg %p1014_p6 }
  0x7d   : > { %v328_v36 = vld [vmem:[%s1324_s11 + $0x268] sm:$0xff]  ;;  %v330_v37 = vld [vmem:[%s1324_s11 + $0x278] sm:$0xff]  ;;  %v771_v39 = vpack.c.bf16 %v325_v33, %v323_v32  ;;  %v709_v40 = vpack.c.bf16 %v266_v35, %v264_v34  ;;  %v263_v42 = vld [vmem:[%s1324_s11 + $0x60] sm:$0xff]  ;;  %p1021_p13 = por %p1020_p9, %p1019_p3 }
  0x7e   : > { %v773_v41 = vpack.c.bf16 %v330_v37, %v328_v36  ;;  %v265_v43 = vld [vmem:[%s1324_s11 + $0x70] sm:$0xff]  ;;  %v327_v44 = vld [vmem:[%s1324_s11 + $0x260] sm:$0xff]  ;;  %v268_v46 = vld [vmem:[%s1324_s11 + $0x88] sm:$0xff] }
  0x7f   : > { %v329_v45 = vld [vmem:[%s1324_s11 + $0x270] sm:$0xff]  ;;  %v270_v47 = vld [vmem:[%s1324_s11 + $0x98] sm:$0xff]  ;;  %v332_v48 = vld [vmem:[%s1324_s11 + $0x288] sm:$0xff]  ;;  %v711_v50 = vpack.c.bf16 %v265_v43, %v263_v42  ;;  %p1022_p4 = pnand %p1021_p13, %p1015_p2 }
  0x80   : > { %v334_v49 = vld [vmem:[%s1324_s11 + $0x298] sm:$0xff]  ;;  %v775_v51 = vpack.c.bf16 %v329_v45, %v327_v44  ;;  %v713_v52 = vpack.c.bf16 %v270_v47, %v268_v46  ;;  %v267_v54 = vld [vmem:[%s1324_s11 + $0x80] sm:$0xff]  ;;  %v269_v55 = vld [vmem:[%s1324_s11 + $0x90] sm:$0xff] }
  0x81   : > { %704 = vmatpush1.bf16.xpose.msra.mxu0 %v703_v26  ;;  %v777_v53 = vpack.c.bf16 %v334_v49, %v332_v48  ;;  %v331_v56 = vld [vmem:[%s1324_s11 + $0x280] sm:$0xff]  ;;  %v333_v57 = vld [vmem:[%s1324_s11 + $0x290] sm:$0xff]  ;;  %v272_v58 = vld [vmem:[%s1324_s11 + $0xa8] sm:$0xff]  ;;  %v715_v62 = vpack.c.bf16 %v269_v55, %v267_v54 }
  0x82   : > { %768 = vmatpush1.bf16.xpose.msra.mxu1 %v767_v27  ;;  %706 = vmatprep.subr.bf16.mxu0 %v705_v28  ;;  %v274_v59 = vld [vmem:[%s1324_s11 + $0xb8] sm:$0xff]  ;;  %v336_v60 = vld [vmem:[%s1324_s11 + $0x2a8] sm:$0xff]  ;;  %v779_v63 = vpack.c.bf16 %v333_v57, %v331_v56  ;;  %v271_v2 = vld [vmem:[%s1324_s11 + $0xa0] sm:$0xff] }
  0x83   : > { %770 = vmatprep.subr.bf16.mxu1 %v769_v29  ;;  %v338_v61 = vld [vmem:[%s1324_s11 + $0x2b8] sm:$0xff]  ;;  %v717_v0 = vpack.c.bf16 %v274_v59, %v272_v58  ;;  %v273_v3 = vld [vmem:[%s1324_s11 + $0xb0] sm:$0xff]  ;;  %v335_v4 = vld [vmem:[%s1324_s11 + $0x2a0] sm:$0xff] }
  0x84   : > { %v781_v1 = vpack.c.bf16 %v338_v61, %v336_v60  ;;  %v337_v5 = vld [vmem:[%s1324_s11 + $0x2b0] sm:$0xff]  ;;  %v276_v6 = vld [vmem:[%s1324_s11 + $0xc8] sm:$0xff]  ;;  %v278_v7 = vld [vmem:[%s1324_s11 + $0xd8] sm:$0xff]  ;;  %v719_v10 = vpack.c.bf16 %v273_v3, %v271_v2 }
  0x85   : > { %v340_v8 = vld [vmem:[%s1324_s11 + $0x2c8] sm:$0xff]  ;;  %v342_v9 = vld [vmem:[%s1324_s11 + $0x2d8] sm:$0xff]  ;;  %v783_v11 = vpack.c.bf16 %v337_v5, %v335_v4  ;;  %v721_v12 = vpack.c.bf16 %v278_v7, %v276_v6  ;;  %v275_v17 = vld [vmem:[%s1324_s11 + $0xc0] sm:$0xff] }
  0x86   : > { %v785_v13 = vpack.c.bf16 %v342_v9, %v340_v8  ;;  %v246_v14 = vld [vmem:[#allocation2 + $0x8] sm:$0xff]  ;;  %v248_v15 = vld [vmem:[#allocation5 + $0x8] sm:$0xff]  ;;  %v277_v18 = vld [vmem:[%s1324_s11 + $0xd0] sm:$0xff] }
  0x87   : > { %v250_v16 = vmul.f32 %v248_v15, %v246_v14  ;;  %v339_v19 = vld [vmem:[%s1324_s11 + $0x2c0] sm:$0xff]  ;;  %v341_v20 = vld [vmem:[%s1324_s11 + $0x2d0] sm:$0xff]  ;;  %v280_v21 = vld [vmem:[%s1324_s11 + $0xe8] sm:$0xff]  ;;  %v723_v25 = vpack.c.bf16 %v277_v18, %v275_v17 }
  0x88   : > { %v282_v22 = vld [vmem:[%s1324_s11 + $0xf8] sm:$0xff]  ;;  %v344_v23 = vld [vmem:[%s1324_s11 + $0x2e8] sm:$0xff]  ;;  %v787_v26 = vpack.c.bf16 %v341_v20, %v339_v19  ;;  %v279_v29 = vld [vmem:[%s1324_s11 + $0xe0] sm:$0xff] }
  0x89   : > { %708 = vmatpush1.bf16.xpose.msra.mxu0 %v707_v38  ;;  %443 = vmatprep.mubr.f32.mxu0 %v250_v16  ;;  %v346_v24 = vld [vmem:[%s1324_s11 + $0x2f8] sm:$0xff]  ;;  %v725_v27 = vpack.c.bf16 %v282_v22, %v280_v21  ;;  %v281_v30 = vld [vmem:[%s1324_s11 + $0xf0] sm:$0xff]  ;;  %v343_v31 = vld [vmem:[%s1324_s11 + $0x2e0] sm:$0xff] }
  0x8a   : > { %772 = vmatpush1.bf16.xpose.msra.mxu1 %v771_v39  ;;  %710 = vmatprep.subr.bf16.mxu0 %v709_v40  ;;  %v789_v28 = vpack.c.bf16 %v346_v24, %v344_v23  ;;  %v345_v32 = vld [vmem:[%s1324_s11 + $0x2f0] sm:$0xff]  ;;  %v284_v33 = vld [vmem:[%s1324_s11 + $0x108] sm:$0xff]  ;;  %v286_v34 = vld [vmem:[%s1324_s11 + $0x118] sm:$0xff]  ;;  %v727_v37 = vpack.c.bf16 %v281_v30, %v279_v29 }
  0x8b   : > { %774 = vmatprep.subr.bf16.mxu1 %v773_v41  ;;  %514 = vmatprep.mubr.f32.mxu1 %v250_v16  ;;  %v348_v35 = vld [vmem:[%s1324_s11 + $0x308] sm:$0xff]  ;;  %v350_v36 = vld [vmem:[%s1324_s11 + $0x318] sm:$0xff]  ;;  %v791_v38 = vpack.c.bf16 %v345_v32, %v343_v31  ;;  %v729_v39 = vpack.c.bf16 %v286_v34, %v284_v33  ;;  %v283_v41 = vld [vmem:[%s1324_s11 + $0x100] sm:$0xff] }
  0x8c   : > { %v793_v40 = vpack.c.bf16 %v350_v36, %v348_v35  ;;  %v285_v42 = vld [vmem:[%s1324_s11 + $0x110] sm:$0xff]  ;;  %v347_v43 = vld [vmem:[%s1324_s11 + $0x300] sm:$0xff]  ;;  %v288_v45 = vld [vmem:[%s1324_s11 + $0x128] sm:$0xff] }
  0x8d   : > { %v349_v44 = vld [vmem:[%s1324_s11 + $0x310] sm:$0xff]  ;;  %v290_v46 = vld [vmem:[%s1324_s11 + $0x138] sm:$0xff]  ;;  %v352_v47 = vld [vmem:[%s1324_s11 + $0x328] sm:$0xff]  ;;  %v731_v49 = vpack.c.bf16 %v285_v42, %v283_v41 }
  0x8e   : > { %v354_v48 = vld [vmem:[%s1324_s11 + $0x338] sm:$0xff]  ;;  %v289_v54 = vld [vmem:[%s1324_s11 + $0x130] sm:$0xff]  ;;  %v351_v55 = vld [vmem:[%s1324_s11 + $0x320] sm:$0xff] }
  0x8f   : > { %v353_v56 = vld [vmem:[%s1324_s11 + $0x330] sm:$0xff]  ;;  %v292_v57 = vld [vmem:[%s1324_s11 + $0x148] sm:$0xff]  ;;  %v294_v58 = vld [vmem:[%s1324_s11 + $0x158] sm:$0xff] }
  0x90   : > { %v356_v59 = vld [vmem:[%s1324_s11 + $0x348] sm:$0xff]  ;;  %v358_v60 = vld [vmem:[%s1324_s11 + $0x358] sm:$0xff]  ;;  %v293_v2 = vld [vmem:[%s1324_s11 + $0x150] sm:$0xff] }
  0x91   : > { %712 = vmatpush1.bf16.xpose.msra.mxu0 %v711_v50  ;;  %v795_v50 = vpack.c.bf16 %v349_v44, %v347_v43  ;;  %v355_v3 = vld [vmem:[%s1324_s11 + $0x340] sm:$0xff]  ;;  %v357_v4 = vld [vmem:[%s1324_s11 + $0x350] sm:$0xff]  ;;  %v296_v5 = vld [vmem:[%s1324_s11 + $0x168] sm:$0xff] }
  0x92   : > { %776 = vmatpush1.bf16.xpose.msra.mxu1 %v775_v51  ;;  %714 = vmatprep.subr.bf16.mxu0 %v713_v52  ;;  %v733_v51 = vpack.c.bf16 %v290_v46, %v288_v45  ;;  %v797_v52 = vpack.c.bf16 %v354_v48, %v352_v47  ;;  %v298_v6 = vld [vmem:[%s1324_s11 + $0x178] sm:$0xff]  ;;  %v360_v7 = vld [vmem:[%s1324_s11 + $0x368] sm:$0xff]  ;;  %v297_v14 = vld [vmem:[%s1324_s11 + $0x170] sm:$0xff] }
  0x93   : > { %778 = vmatprep.subr.bf16.mxu1 %v777_v53  ;;  %v287_v53 = vld [vmem:[%s1324_s11 + $0x120] sm:$0xff]  ;;  %v362_v8 = vld [vmem:[%s1324_s11 + $0x378] sm:$0xff]  ;;  %v361_v16 = vld [vmem:[%s1324_s11 + $0x370] sm:$0xff] }
  0x94   : > { %v735_v61 = vpack.c.bf16 %v289_v54, %v287_v53  ;;  %v359_v15 = vld [vmem:[%s1324_s11 + $0x360] sm:$0xff]  ;;  %v300_v17 = vld [vmem:[%s1324_s11 + $0x188] sm:$0xff]  ;;  %v302_v18 = vld [vmem:[%s1324_s11 + $0x198] sm:$0xff] }
  0x95   : > { %v364_v19 = vld [vmem:[%s1324_s11 + $0x388] sm:$0xff]  ;;  %v366_v20 = vld [vmem:[%s1324_s11 + $0x398] sm:$0xff]  ;;  %v807_v22 = vpack.c.bf16 %v361_v16, %v359_v15  ;;  %v745_v23 = vpack.c.bf16 %v302_v18, %v300_v17 }
  0x96   : > { %v809_v24 = vpack.c.bf16 %v366_v20, %v364_v19  ;;  %v304_v29 = vld [vmem:[%s1324_s11 + $0x1a8] sm:$0xff]  ;;  %v306_v30 = vld [vmem:[%s1324_s11 + $0x1b8] sm:$0xff] }
  0x97   : > { %v368_v31 = vld [vmem:[%s1324_s11 + $0x3a8] sm:$0xff]  ;;  %v370_v32 = vld [vmem:[%s1324_s11 + $0x3b8] sm:$0xff]  ;;  %v749_v35 = vpack.c.bf16 %v306_v30, %v304_v29 }
  0x98   : > { %v813_v36 = vpack.c.bf16 %v370_v32, %v368_v31  ;;  %v308_v41 = vld [vmem:[%s1324_s11 + $0x1c8] sm:$0xff]  ;;  %v310_v42 = vld [vmem:[%s1324_s11 + $0x1d8] sm:$0xff] }
  0x99   : > { %716 = vmatpush1.bf16.xpose.msra.mxu0 %v715_v62  ;;  %v799_v62 = vpack.c.bf16 %v353_v56, %v351_v55  ;;  %v372_v43 = vld [vmem:[%s1324_s11 + $0x3c8] sm:$0xff]  ;;  %v374_v44 = vld [vmem:[%s1324_s11 + $0x3d8] sm:$0xff]  ;;  %v753_v47 = vpack.c.bf16 %v310_v42, %v308_v41 }
  0x9a   : > { %780 = vmatpush1.bf16.xpose.msra.mxu1 %v779_v63  ;;  %718 = vmatprep.subr.bf16.mxu0 %v717_v0  ;;  %v737_v63 = vpack.c.bf16 %v294_v58, %v292_v57  ;;  %v801_v0 = vpack.c.bf16 %v358_v60, %v356_v59  ;;  %v817_v48 = vpack.c.bf16 %v374_v44, %v372_v43  ;;  %v312_v53 = vld [vmem:[%s1324_s11 + $0x1e8] sm:$0xff]  ;;  %v314_v54 = vld [vmem:[%s1324_s11 + $0x1f8] sm:$0xff] }
  0x9b   : > { %782 = vmatprep.subr.bf16.mxu1 %v781_v1  ;;  %v291_v1 = vld [vmem:[%s1324_s11 + $0x140] sm:$0xff]  ;;  %v376_v55 = vld [vmem:[%s1324_s11 + $0x3e8] sm:$0xff]  ;;  %v378_v56 = vld [vmem:[%s1324_s11 + $0x3f8] sm:$0xff]  ;;  %v757_v59 = vpack.c.bf16 %v314_v54, %v312_v53 }
  0x9c   : > { %v739_v9 = vpack.c.bf16 %v293_v2, %v291_v1  ;;  %v821_v60 = vpack.c.bf16 %v378_v56, %v376_v55 }
  0xa1   : > { %720 = vmatpush1.bf16.xpose.msra.mxu0 %v719_v10  ;;  %v803_v10 = vpack.c.bf16 %v357_v4, %v355_v3  ;;  %v245_v3 = vld [vmem:[#allocation2] sm:$0xff]  ;;  %v247_v4 = vld [vmem:[#allocation5] sm:$0xff] }
  0xa2   : > { %784 = vmatpush1.bf16.xpose.msra.mxu1 %v783_v11  ;;  %722 = vmatprep.subr.bf16.mxu0 %v721_v12  ;;  %v741_v11 = vpack.c.bf16 %v298_v6, %v296_v5  ;;  %v805_v12 = vpack.c.bf16 %v362_v8, %v360_v7  ;;  %v249_v5 = vmul.f32 %v247_v4, %v245_v3 }
  0xa3   : > { %786 = vmatprep.subr.bf16.mxu1 %v785_v13  ;;  %v295_v13 = vld [vmem:[%s1324_s11 + $0x160] sm:$0xff] }
  0xa4   : > { %v743_v21 = vpack.c.bf16 %v297_v14, %v295_v13 }
  0xa9   : > { %724 = vmatpush1.bf16.xpose.msra.mxu0 %v723_v25  ;;  %v299_v25 = vld [vmem:[%s1324_s11 + $0x180] sm:$0xff] }
  0xaa   : > { %788 = vmatpush1.bf16.xpose.msra.mxu1 %v787_v26  ;;  %726 = vmatprep.subr.bf16.mxu0 %v725_v27  ;;  %v301_v26 = vld [vmem:[%s1324_s11 + $0x190] sm:$0xff]  ;;  %v363_v27 = vld [vmem:[%s1324_s11 + $0x380] sm:$0xff] }
  0xab   : > { %790 = vmatprep.subr.bf16.mxu1 %v789_v28  ;;  %v365_v28 = vld [vmem:[%s1324_s11 + $0x390] sm:$0xff]  ;;  %v747_v33 = vpack.c.bf16 %v301_v26, %v299_v25 }
  0xac   : > { %v811_v34 = vpack.c.bf16 %v365_v28, %v363_v27 }
  0xb1   : > { %728 = vmatpush1.bf16.xpose.msra.mxu0 %v727_v37  ;;  %v303_v37 = vld [vmem:[%s1324_s11 + $0x1a0] sm:$0xff] }
  0xb2   : > { %792 = vmatpush1.bf16.xpose.msra.mxu1 %v791_v38  ;;  %730 = vmatprep.subr.bf16.mxu0 %v729_v39  ;;  %v305_v38 = vld [vmem:[%s1324_s11 + $0x1b0] sm:$0xff]  ;;  %v367_v39 = vld [vmem:[%s1324_s11 + $0x3a0] sm:$0xff] }
  0xb3   : > { %794 = vmatprep.subr.bf16.mxu1 %v793_v40  ;;  %v369_v40 = vld [vmem:[%s1324_s11 + $0x3b0] sm:$0xff]  ;;  %v751_v45 = vpack.c.bf16 %v305_v38, %v303_v37 }
  0xb4   : > { %v815_v46 = vpack.c.bf16 %v369_v40, %v367_v39 }
  0xb9   : > { %732 = vmatpush1.bf16.xpose.msra.mxu0 %v731_v49  ;;  %v307_v49 = vld [vmem:[%s1324_s11 + $0x1c0] sm:$0xff] }
  0xba   : > { %796 = vmatpush1.bf16.xpose.msra.mxu1 %v795_v50  ;;  %734 = vmatprep.subr.bf16.mxu0 %v733_v51  ;;  %v309_v50 = vld [vmem:[%s1324_s11 + $0x1d0] sm:$0xff]  ;;  %v371_v51 = vld [vmem:[%s1324_s11 + $0x3c0] sm:$0xff] }
  0xbb   : > { %798 = vmatprep.subr.bf16.mxu1 %v797_v52  ;;  %v373_v52 = vld [vmem:[%s1324_s11 + $0x3d0] sm:$0xff]  ;;  %v755_v57 = vpack.c.bf16 %v309_v50, %v307_v49 }
  0xbc   : > { %v819_v58 = vpack.c.bf16 %v373_v52, %v371_v51 }
  0xc1   : > { %736 = vmatpush1.bf16.xpose.msra.mxu0 %v735_v61  ;;  %v311_v61 = vld [vmem:[%s1324_s11 + $0x1e0] sm:$0xff] }
  0xc2   : > { %800 = vmatpush1.bf16.xpose.msra.mxu1 %v799_v62  ;;  %738 = vmatprep.subr.bf16.mxu0 %v737_v63  ;;  %v313_v62 = vld [vmem:[%s1324_s11 + $0x1f0] sm:$0xff]  ;;  %v375_v63 = vld [vmem:[%s1324_s11 + $0x3e0] sm:$0xff] }
  0xc3   : > { %802 = vmatprep.subr.bf16.mxu1 %v801_v0  ;;  %v377_v0 = vld [vmem:[%s1324_s11 + $0x3f0] sm:$0xff]  ;;  %v759_v1 = vpack.c.bf16 %v313_v62, %v311_v61 }
  0xc4   : > { %v823_v2 = vpack.c.bf16 %v377_v0, %v375_v63 }
  0xc9   : > { %740 = vmatpush1.bf16.xpose.msra.mxu0 %v739_v9 }
  0xca   : > { %804 = vmatpush1.bf16.xpose.msra.mxu1 %v803_v10  ;;  %742 = vmatprep.subr.bf16.mxu0 %v741_v11 }
  0xcb   : > { %806 = vmatprep.subr.bf16.mxu1 %v805_v12 }
  0xd1   : > { %744 = vmatpush1.bf16.xpose.msra.mxu0 %v743_v21 }
  0xd2   : > { %808 = vmatpush1.bf16.xpose.msra.mxu1 %v807_v22  ;;  %746 = vmatprep.subr.bf16.mxu0 %v745_v23 }
  0xd3   : > { %810 = vmatprep.subr.bf16.mxu1 %v809_v24 }
  0xd9   : > { %748 = vmatpush1.bf16.xpose.msra.mxu0 %v747_v33 }
  0xda   : > { %812 = vmatpush1.bf16.xpose.msra.mxu1 %v811_v34  ;;  %750 = vmatprep.subr.bf16.mxu0 %v749_v35 }
  0xdb   : > { %814 = vmatprep.subr.bf16.mxu1 %v813_v36 }
  0xe1   : > { %752 = vmatpush1.bf16.xpose.msra.mxu0 %v751_v45 }
  0xe2   : > { %816 = vmatpush1.bf16.xpose.msra.mxu1 %v815_v46  ;;  %754 = vmatprep.subr.bf16.mxu0 %v753_v47 }
  0xe3   : > { %818 = vmatprep.subr.bf16.mxu1 %v817_v48 }
  0xe9   : > { %756 = vmatpush1.bf16.xpose.msra.mxu0 %v755_v57 }
  0xea   : > { %820 = vmatpush1.bf16.xpose.msra.mxu1 %v819_v58  ;;  %758 = vmatprep.subr.bf16.mxu0 %v757_v59 }
  0xeb   : > { %822 = vmatprep.subr.bf16.mxu1 %v821_v60 }
  0xf1   : > { %760 = vmatpush1.bf16.xpose.msra.mxu0 %v759_v1 }
  0xf2   : > { %824 = vmatpush1.bf16.xpose.msra.mxu1 %v823_v2 }
  0xf8   : > { %444 = vmatmul.mubr.f32.vlgmr.msra.gmra.mrb[0].mxu0 %v249_v5 }
  0xf9   : > { %515 = vmatmul.mubr.f32.vlgmr.msra.gmra.mrb[0].mxu1 %v249_v5 }
 0x1cb   : > { %v445_v6 = vpop.f32.mrb[0].mxu0 }
 0x1cc   : > { %v685_v7 = vmul.f32 -1.442695, %v445_v6  ;;  %v516_v8 = vpop.f32.mrb[0].mxu1  ;;  %v447_v9 = vpop.f32.mrb[1].mxu0 }
 0x1cd   : > { %v687_v10 = vmul.f32 -1.442695, %v516_v8  ;;  %v686_v11 = vmul.f32 -1.442695, %v447_v9  ;;  %v518_v12 = vpop.f32.mrb[1].mxu1 }
 0x1ce   : > { %910 = vpow2.f32 %v685_v7  ;;  %v688_v13 = vmul.f32 -1.442695, %v518_v12 }
 0x1cf   : > { %912 = vpow2.f32 %v687_v10 }
 0x1d0   : > { %914 = vpow2.f32 %v686_v11 }
 0x1d1   : > { %916 = vpow2.f32 %v688_v13 }
 0x1d8   : > { %v911_v14 = vpop.eup %910 }
 0x1d9   : > { %v913_v15 = vpop.eup %912  ;;  %v533_v16 = vadd.f32 1.0, %v911_v14 }
 0x1da   : > { %v915_v17 = vpop.eup %914  ;;  %v535_v18 = vadd.f32 1.0, %v913_v15 }
 0x1db   : > { %v917_v19 = vpop.eup %916  ;;  %918 = vrcp.f32 %v533_v16  ;;  %v534_v20 = vadd.f32 1.0, %v915_v17 }
 0x1dc   : > { %920 = vrcp.f32 %v535_v18  ;;  %v536_v21 = vadd.f32 1.0, %v917_v19 }
 0x1dd   : > { %922 = vrcp.f32 %v534_v20 }
 0x1de   : > { %924 = vrcp.f32 %v536_v21 }
 0x1e5   : > { %v919_v22 = vpop.eup %918 }
 0x1e6   : > { %v921_v23 = vpop.eup %920  ;;  %545 = vst [vmem:[%s242_s5] sm:$0xff] %v919_v22 }
 0x1e7   : > { %v923_v24 = vpop.eup %922  ;;  %547 = vst [vmem:[%s242_s5 + $0x10] sm:$0xff] %v921_v23 }
 0x1e8   : > { %v925_v25 = vpop.eup %924  ;;  %546 = vst [vmem:[%s242_s5 + $0x8] sm:$0xff] %v923_v24 }
 0x1e9   : > { %548 = vst [vmem:[%s242_s5 + $0x18] sm:$0xff] %v925_v25 }
 0x1ea   : > { %1025 = shalt.err (!%p1022_p4)
}
 0x1eb   : > { %s1026_s29 = scalar_lea.hbm %s1463_s20, 512  ;;  %s1030_s25 = scalar_lea.hbm %s1515_s3, 1024 }
 0x1ec   : > { %p1027_p8 = scmp.ne.s32.totalorder %s1463_s20, %s1026_s29  ;;  %p1031_p10 = scmp.lt.u32.totalorder %s1463_s20, %s1515_s3 }
 0x1ed   : > { %p1032_p11 = scmp.lt.u32.totalorder %s1030_s25, %s1026_s29  ;;  %p1034_p1 = scmp.lt.u32.totalorder %s1026_s29, %s1463_s20 }
 0x1ee   : > { %p1028_p12 = pnand %p1027_p8, %p1535_p0 }
 0x1ef   : > { %p1033_p7 = por %p1032_p11, %p1031_p10 }
 0x1f0   : > { %p1029_p5 = pneg %p1028_p12 }
 0x1f1   : > { %p1035_p6 = por %p1034_p1, %p1033_p7 }
 0x1f3   : > { %p1036_p2 = pnand %p1035_p6, %p1029_p5 }
 0x1f5   : > { %1039 = shalt.err (!%p1036_p2)
}
 0x1f6   : > { %835 = dma.vmem_to_hbm [thread:$0]  (%p1535_p0), %s1465_s4, 512, %s1463_s20, %s550_s15  }
 0x1f7 PF: > { %s578_s18 = sand.u32 1, %s1082_s12   ;;  %p1536_p3 = scmp.ne.s32.totalorder %s1524_s24, 0 }
 0x1f8   : > { %p1537_p9 = scmp.ge.s32.totalorder %s1102_s17, 2  ;;  %s579_s22 = scalar_lea.sflag [#allocation4], %s578_s18 }
 0x1fa   : > { %p849_p13 = pnand %p1537_p9, %p1536_p3 }
 0x1fc   : > { %1077 = dma.done.wait (!%p849_p13), %s579_s22, 512  }
 0x1fd   : > { %1079 = vsyncadd (!%p849_p13), %s579_s22, 4294966784  ;;  %s18_s17 = sadd.s32 1, %s1102_s17   ;;  %s1538_s12 = smov %s1086_s13 }
 0x1fe   : > { %p15_p4 = scmp.ge.s32.totalorder %s18_s17, 4   ;;  %s1539_s13 = smov %s1090_s14 }
 0x1ff   : > { %s1540_s14 = smov %s1279_s27  ;;  %s1541_s15 = smov %s1098_s16 }
 0x200   : > { %s1542_s16 = smov %s1544_s21  ;;  %17 = sbr.rel (!%p15_p4) target bundleno = 6 (0x6), region = 86 }
 0x207   :  { %584 = vsyncpa [#allocation3], 1 }
 0x208   :  { %586 = vsyncpa [#allocation3 + $0x1], 1 }
 0x209   :  { %587 = vsyncpa [#allocation6], 1 }
 0x20a   :  { %588 = vsyncpa [#allocation4], 1 }
 0x20b   :  { %590 = vsyncpa [#allocation4 + $0x1], 1 }

</bundles_post_ra>
